<compile_context>
chip_gen: v5e
topology: v5e:2x2
jax: 0.10.0
libtpu: 0.0.40
codegen_flags: <defaults>
</compile_context>

<pallas_src>
import numpy as np
import jax
import jax.numpy as jnp
from jax.experimental import pallas as pl
from jax.experimental.pallas import tpu as pltpu

_LANES = 128
_SUBLANES = 8
_TILE = _LANES * _SUBLANES  # 1024 f32 per (8, 128) padding unit


# --------------------------------------------------------------------------
# Kernel: mean = fixed_input_scalar * W   (degenerate (1,1)@(1,4) matmul)
# --------------------------------------------------------------------------
def _mean_kernel(x_ref, w_ref, mean_ref):
    # x_ref:    (1, 1) fixed input scalar in SMEM (== 1.0 in this model)
    # w_ref:    (R, 128) lane-dense slab of stacked Linear(1,4,bias=False) weights
    # mean_ref: (R, 128) lane-dense slab of means (unmasked full-lane stores)
    mean_ref[...] = x_ref[0, 0] * w_ref[...]


# --------------------------------------------------------------------------
# One-time host-side setup (no per-call device work)
# --------------------------------------------------------------------------
def _pack_lane_dense_host(a_np):
    """Flatten an (N, F) f32 numpy array into a lane-dense (R, 128) slab, R % 8 == 0."""
    flat = np.asarray(a_np, dtype=np.float32).reshape(-1)
    n = flat.shape[0]
    padded = ((n + _TILE - 1) // _TILE) * _TILE
    flat = np.pad(flat, (0, padded - n))
    return flat.reshape(padded // _LANES, _LANES)


def make_params(n_gauss_0, n_gauss_1):
    """Deterministic parameter init mirroring GaussianPolicy2D.__init__/init_weights.

    Returns:
      w_slab_dev:   pre-packed (R, 128) f32 device array (constant across calls)
      logstd_host:  (N, 4) numpy constant (std == logstd via expand_as identity)
      shape:        (n_total, 4) logical shape of the stacked means
    """
    n_total = n_gauss_0 + n_gauss_1
    # torch: layer.weight is (4, 1); init_weights sets rows 0,1 -> 0 and 2,3 -> 1
    # stacked (N, 4): each row is weight[:, 0] = [0, 0, 1, 1]
    w_stacked = np.tile(np.array([0.0, 0.0, 1.0, 1.0], dtype=np.float32), (n_total, 1))
    w_slab_dev = jnp.asarray(_pack_lane_dense_host(w_stacked))  # packed ONCE
    # torch: nn.Parameter(torch.ones(1, 4)) * 0.05 -> constant 0.05 (never on device)
    logstd_host = np.full((n_total, 4), 0.05, dtype=np.float32)
    return w_slab_dev, logstd_host, (n_total, 4)


# --------------------------------------------------------------------------
# Device forward: single fused executable (jit around one pallas_call)
# --------------------------------------------------------------------------
@jax.jit
def gaussian_policy_forward(fixed_input, w_slab):
    """mean_slab = fixed_input * W_slab, lane-dense, gridless, VPU-only."""
    return pl.pallas_call(
        _mean_kernel,
        out_shape=jax.ShapeDtypeStruct(w_slab.shape, jnp.float32),
        in_specs=[
            pl.BlockSpec(memory_space=pltpu.SMEM),   # (1,1) scalar fixed input
            pl.BlockSpec(memory_space=pltpu.VMEM),   # lane-dense weight slab
        ],
        out_specs=pl.BlockSpec(memory_space=pltpu.VMEM),
    )(fixed_input, w_slab)


# --------------------------------------------------------------------------
# Host-side unpack/split: one device_get, zero-copy numpy views
# --------------------------------------------------------------------------
def split_outputs(mean_slab, logstd_host, n_gauss_0, n_gauss_1):
    """Returns (val_0, val_1, std_0, std_1) lists of (1, 4) arrays.

    NOTE: like torch's expand_as, the std_* views alias one backing array.
    """
    n_total = n_gauss_0 + n_gauss_1
    mean_h = np.asarray(jax.device_get(mean_slab)).reshape(-1)[: n_total * 4]
    mean_h = mean_h.reshape(n_total, 4)
    val_0 = [mean_h[i:i + 1, :] for i in range(n_gauss_0)]
    val_1 = [mean_h[n_gauss_0 + i:n_gauss_0 + i + 1, :] for i in range(n_gauss_1)]
    std_0 = [logstd_host[i:i + 1, :] for i in range(n_gauss_0)]
    std_1 = [logstd_host[n_gauss_0 + i:n_gauss_0 + i + 1, :] for i in range(n_gauss_1)]
    return val_0, val_1, std_0, std_1


def gaussian_policy_2d(n_gauss_0, n_gauss_1):
    """Full forward(), matching the PyTorch module's return structure."""
    w_slab, logstd_host, _ = make_params(n_gauss_0, n_gauss_1)
    fixed_input = jnp.ones((1, 1), dtype=jnp.float32)  # torch.ones(1).view(1, 1)
    mean_slab = gaussian_policy_forward(fixed_input, w_slab)
    return split_outputs(mean_slab, logstd_host, n_gauss_0, n_gauss_1)


if __name__ == "__main__":
    # forward() takes no data inputs (fixed_input is ones); key kept for protocol.
    _ = jax.random.PRNGKey(0)

    n_gauss_0, n_gauss_1 = 2, 3
    w_slab, logstd_host, _ = make_params(n_gauss_0, n_gauss_1)   # one-time setup
    fixed_input = jnp.ones((1, 1), dtype=jnp.float32)

    mean_slab = gaussian_policy_forward(fixed_input, w_slab)
    jax.block_until_ready(mean_slab)

    val_0, val_1, std_0, std_1 = split_outputs(
        mean_slab, logstd_host, n_gauss_0, n_gauss_1)

    expected_mean = np.array([[0.0, 0.0, 1.0, 1.0]], dtype=np.float32)
    expected_std = np.full((1, 4), 0.05, dtype=np.float32)
    ok = True
    for v in val_0 + val_1:
        ok &= bool(np.allclose(v, expected_mean))
        ok &= v.shape == (1, 4)
    for s in std_0 + std_1:
        ok &= bool(np.allclose(s, expected_std))
        ok &= s.shape == (1, 4)
    assert ok, "mismatch vs. PyTorch reference semantics"
    print("KERNEL_OK")
</pallas_src>

<mosaic_0001>
module attributes {stable_mosaic.version = 11 : i64} {
  func.func @_mean_kernel(%arg0: memref<1x1xf32, #tpu.memory_space<smem>>, %arg1: memref<8x128xf32, #tpu.memory_space<vmem>>, %arg2: memref<8x128xf32, #tpu.memory_space<vmem>>) attributes {dimension_semantics = [], scalar_prefetch = 0 : i64, scratch_operands = 0 : i64, tpu.core_type = #tpu.core_type<tc>} {
    %c0 = arith.constant 0 : index
    %c0_0 = arith.constant 0 : index
    %0 = memref.load %arg0[%c0, %c0_0] : memref<1x1xf32, #tpu.memory_space<smem>>
    %c0_1 = arith.constant 0 : index
    %c0_2 = arith.constant 0 : index
    %1 = vector.load %arg1[%c0_1, %c0_2] : memref<8x128xf32, #tpu.memory_space<vmem>>, vector<8x128xf32>
    %2 = vector.broadcast %0 : f32 to vector<8x128xf32>
    %3 = arith.mulf %2, %1 : vector<8x128xf32>
    %c0_3 = arith.constant 0 : index
    %c0_4 = arith.constant 0 : index
    %4 = vector.load %arg2[%c0_3, %c0_4] : memref<8x128xf32, #tpu.memory_space<vmem>>, vector<8x128xf32>
    tpu.vector_store %arg2[%c0_3, %c0_4], %3 {strides = array<i32>} : memref<8x128xf32, #tpu.memory_space<vmem>>, vector<8x128xf32>,
    return
  }
}

</mosaic_0001>

<bundles_post_ra>
// kernel: gaussian_policy_forward.1
= control target key start
LH: loop header
LB: loop body
LE: loop exit
PB: predicated region body
PF: predicated region fallthrough
CT: control target
= control target key end

     0   :  { %8 = vsyncpa [#allocation4], 0  ;;  %s129_s0 = inlined_call_operand.<no memory space> [shape: f32[1,1], index: 0, kind: input, shape index: {}]   ;;  %s130_s1 = inlined_call_operand.hbm [shape: f32[8,128], index: 1, kind: input, shape index: {}]   ;;  %s131_s2 = inlined_call_operand.hbm [shape: f32[8,128], index: 2, kind: output, shape index: {}]  }
   0x1   :  { %9 = vsyncpa [#allocation5], 0  ;;  %s17_s11 = sshll.u32 %s130_s1, 4  ;;  %s103_s12 = smov [#allocation3]   ;;  %s18_s11 = int_to_ptr.hbm [resolvable:$true] %s17_s11 }
   0x2   :  { %s19_s13 = sshll.u32 %s103_s12, 4  ;;  %s20_s13 = int_to_ptr.vmem [resolvable:$true] %s19_s13 }
   0x3   :  { %22 = dma.hbm_to_vmem [thread:$0]  %s18_s11, 128, %s20_s13, [#allocation4]  }
   0x4   :  { %99 = dma.done.wait [#allocation4], 128  }
   0x5   :  { %100 = vsyncadd [#allocation4], 4294967168  ;;  %v29_v0 = vstv %s129_s0  ;;  %s104_s16 = smov [#allocation6]   ;;  %s39_s20 = sshll.u32 %s131_s2, 4  ;;  %v28_v1 = vld [vmem:[#allocation3] sm:$0xff]  ;;  %s40_s20 = int_to_ptr.hbm [resolvable:$true] %s39_s20 }
   0x6   :  { %s37_s17 = sshll.u32 %s104_s16, 4  ;;  %v30_v2 = vmul.f32 %v29_v0, %v28_v1  ;;  %s38_s17 = int_to_ptr.vmem [resolvable:$true] %s37_s17 }
   0x8   :  { %31 = vst [vmem:[#allocation6] sm:$0xff] %v30_v2 }
   0x9   :  { %42 = dma.vmem_to_hbm [thread:$0]  %s38_s17, 128, %s40_s20, [#allocation5]  }
   0xa   :  { %101 = dma.done.wait [#allocation5], 128  }
   0xb   :  { %102 = vsyncadd [#allocation5], 4294967168 }
   0xc   :  { %47 = vsyncpa [#allocation4], 1 }
   0xd   :  { %48 = vsyncpa [#allocation5], 1 }

</bundles_post_ra>
